<compile_context>
chip_gen: v7x
topology: tpu7x:2x2x1
jax: 0.10.0
libtpu: 0.0.40
codegen_flags: <defaults>
</compile_context>

<pallas_src>
import functools
import math

import jax
import jax.numpy as jnp
from jax import lax
from jax.experimental import pallas as pl
from jax.experimental.pallas import tpu as pltpu


def _round_up(x, m):
    return ((x + m - 1) // m) * m


def _rel_pos_emb_kernel(jpat_ref, btab_ref, out_ref, *,
                        rows_per_tile, cols_per_tile, max_rel_pos, direction):
    """Writes one (rows_per_tile, cols_per_tile * D) tile of the [Lr, Lc*D] output.

    jpat_ref: (1, W) int32, jpat[0, c] = c // D   (precomputed column -> local j).
    btab_ref: (V, W) table tiled along lanes, btab[v, c] = table[v, c % D].
    """
    gi = pl.program_id(0)
    gj = pl.program_id(1)
    vocab = btab_ref.shape[0]
    hi_row = vocab - 1                       # value when clipped at +mrp
    lo_row = 0 if direction else vocab - 1   # value when clipped at -mrp

    # Relative distance over this tile: d[r, c] = i - j = r + base - jpat[c].
    base = gi * rows_per_tile - gj * cols_per_tile            # scalar
    d_min = base - (cols_per_tile - 1)
    d_max = base + (rows_per_tile - 1)
    sat_hi = d_min >= max_rel_pos            # whole tile clips to +mrp
    sat_lo = d_max <= -max_rel_pos           # whole tile clips to -mrp
    mixed = jnp.logical_and(d_min < max_rel_pos, d_max > -max_rel_pos)

    # Fully saturated tiles (the vast majority for large L): one table row
    # broadcast + store; no gather chain.
    @pl.when(sat_hi)
    def _():
        out_ref[...] = jnp.broadcast_to(
            btab_ref[hi_row:hi_row + 1, :], out_ref.shape).astype(out_ref.dtype)

    @pl.when(sat_lo)
    def _():
        out_ref[...] = jnp.broadcast_to(
            btab_ref[lo_row:lo_row + 1, :], out_ref.shape).astype(out_ref.dtype)

    # Tiles intersecting the |i - j| < mrp band: V-way monotone select gather on
    # the VPU (exactly one final row survives per element -> exact).
    @pl.when(mixed)
    def _():
        row = lax.broadcasted_iota(jnp.int32, out_ref.shape, 0)   # local row r
        joff = jpat_ref[...] - base                               # (1, W)
        d = row - joff                                            # (ti, W) = i - j
        btab = btab_ref[...]
        acc = jnp.broadcast_to(btab[0:1, :], out_ref.shape)
        if direction:
            # idx = clip(d, -mrp, mrp) + mrp, realized as a select chain whose
            # thresholds absorb both the clip and the +mrp offset.
            for v in range(1, vocab):
                acc = jnp.where(d >= v - max_rel_pos, btab[v:v + 1, :], acc)
        else:
            a = jnp.abs(d)                                        # idx = min(|d|, mrp)
            for v in range(1, vocab):
                acc = jnp.where(a >= v, btab[v:v + 1, :], acc)
        out_ref[...] = acc.astype(out_ref.dtype)


def _default_vmem_limit_bytes():
    """~48 MiB on 64-MiB-VMEM parts (v7x), 64 MiB on 128-MiB parts (v5e/v6e)."""
    try:
        cap = int(getattr(pltpu.get_tpu_info(), "vmem_capacity_bytes"))
        if cap > 0:
            return int(min(cap * 3 // 4, 64 * 1024 * 1024))
    except Exception:
        pass
    return 48 * 1024 * 1024


def _pick_tiles(length, depth, out_itemsize, tab_itemsize, vocab, tile_budget_bytes):
    """Pick (ti, tj, Lr, Lc): (8,128)-legal, square-ish tiles + padded extents."""
    tj_unit = 128 // math.gcd(depth, 128)    # smallest tj with (tj * D) % 128 == 0
    elem_bytes = depth * out_itemsize        # one (row, col-group) output cell
    slab_bytes_per_col = (vocab + 1) * depth * max(tab_itemsize, 4)  # btab + jpat

    # Square-ish in (i, j) units minimizes how many tiles touch the diagonal band
    # (everything else takes the broadcast-only fast path).
    s = int(math.isqrt(max(1, tile_budget_bytes // elem_bytes)))
    while s > 8 and s * s * elem_bytes + s * slab_bytes_per_col > tile_budget_bytes:
        s -= 8

    ti = max(8, (min(s, _round_up(length, 8)) // 8) * 8)
    tj = max(tj_unit, (min(s, _round_up(length, tj_unit)) // tj_unit) * tj_unit)

    # Rebalance so padding on the last tile is minimal for awkward lengths.
    n_i = -(-length // ti)
    ti = _round_up(-(-length // n_i), 8)
    n_j = -(-length // tj)
    tj = _round_up(-(-length // n_j), tj_unit)

    # v7x has 2 TensorCores and both grid axes are "parallel": ensure >= 2 grid
    # steps when the problem is large enough to split (harmless on v5e/v6e).
    if n_i == 1 and n_j == 1 and length > 8:
        ti = _round_up(-(-length // 2), 8)

    lr = _round_up(length, ti)
    lc = _round_up(length, tj)
    return ti, tj, lr, lc


def relative_position_embeddings(table, length, max_relative_position, *,
                                 direction=True,
                                 out_dtype=None,
                                 tile_budget_bytes=None,
                                 vmem_limit_bytes=None):
    """table: [vocab, embedding_dim] -> [length, length, embedding_dim]."""
    table = jnp.asarray(table)
    V, D = table.shape
    L = int(length)
    mrp = int(max_relative_position)
    expected_vocab = 2 * mrp + 1 if direction else mrp + 1
    if V != expected_vocab:
        raise ValueError(f"table has {V} rows, expected {expected_vocab}")
    out_dtype = jnp.dtype(table.dtype if out_dtype is None else out_dtype)

    if vmem_limit_bytes is None:
        vmem_limit_bytes = _default_vmem_limit_bytes()
    if tile_budget_bytes is None:
        # Output is double-buffered and the mixed-tile elementwise chain can
        # materialize a few full-tile temporaries -> keep tile at 1/8 of the limit.
        tile_budget_bytes = max(512 * 1024, vmem_limit_bytes // 8)

    ti, tj, Lr, Lc = _pick_tiles(L, D, out_dtype.itemsize, table.dtype.itemsize,
                                 V, tile_budget_bytes)
    W = tj * D
    grid = (Lr // ti, Lc // tj)

    # Tiny layout-plumbing inputs (constant block index -> DMA'd once, resident):
    #   jpat[0, c] = c // D           (column -> local j; avoids in-kernel div/mod)
    #   btab[v, c] = table[v, c % D]  (table tiled across one column tile; selects
    #                                  stay in the table dtype, cast only at store)
    jpat = jnp.repeat(jnp.arange(tj, dtype=jnp.int32), D)[None, :]    # (1, W)
    btab = jnp.tile(table, (1, tj))                                   # (V, W)

    kernel = functools.partial(
        _rel_pos_emb_kernel, rows_per_tile=ti, cols_per_tile=tj,
        max_rel_pos=mrp, direction=direction)

    out2d = pl.pallas_call(
        kernel,
        out_shape=jax.ShapeDtypeStruct((Lr, Lc * D), out_dtype),
        grid=grid,
        in_specs=[
            pl.BlockSpec((1, W), lambda gi, gj: (0, 0)),
            pl.BlockSpec((V, W), lambda gi, gj: (0, 0)),
        ],
        out_specs=pl.BlockSpec((ti, W), lambda gi, gj: (gi, gj)),
        compiler_params=pltpu.CompilerParams(
            dimension_semantics=("parallel", "parallel"),
            vmem_limit_bytes=int(vmem_limit_bytes),
        ),
    )(jpat, btab)

    # TODO(synk): dropout with p > 0 in training mode is not implemented in-kernel;
    # the module's p=0.0 / eval path is the identity, which is what we reproduce.
    # Crop any row/column padding and reshape [L, L*D] -> [L, L, D] in XLA
    # (no copy at all when L needed no padding).
    return out2d[:L, :L * D].reshape(L, L, D)


def _reference(table, length, max_rel_pos, direction=True):
    r = jnp.arange(length)
    dist = jnp.clip(r[:, None] - r[None, :], -max_rel_pos, max_rel_pos)
    idx = dist + max_rel_pos if direction else jnp.abs(dist)
    return jnp.take(table, idx, axis=0)


if __name__ == "__main__":
    # Config consistent with the PyTorch module's forward (direction=True, dropout=0.0).
    max_relative_position = 4
    embedding_dim = 32
    length = 8
    vocab_size = 2 * max_relative_position + 1

    # Deterministic params: uniform_ in [0, 1), then row 0 zeroed (reset_parameters()).
    key = jax.random.PRNGKey(0)
    table = jax.random.uniform(key, (vocab_size, embedding_dim), dtype=jnp.float32)
    table = table.at[0].set(0.0)

    out = relative_position_embeddings(table, length, max_relative_position)
    out = jax.block_until_ready(out)
    ref = _reference(table, length, max_relative_position)
    assert out.shape == (length, length, embedding_dim)
    assert jnp.allclose(out, ref, atol=1e-6), "mismatch vs reference (single tile)"

    # Small forced budget -> 4x4 grid of (8, 256) blocks: exercises row/column index
    # maps, both saturated fast paths and the mixed diagonal-band path.
    mrp2, d2, l2 = 3, 32, 32
    v2 = 2 * mrp2 + 1
    table2 = jax.random.uniform(jax.random.PRNGKey(0), (v2, d2), dtype=jnp.float32)
    out2 = relative_position_embeddings(table2, l2, mrp2, tile_budget_bytes=8 * 1024)
    out2 = jax.block_until_ready(out2)
    ref2 = _reference(table2, l2, mrp2)
    assert out2.shape == (l2, l2, d2)
    assert jnp.allclose(out2, ref2, atol=1e-6), "mismatch vs reference (tiled grid)"

    # Awkward length (not a multiple of 8): exercises the pad-and-crop path.
    mrp3, d3, l3 = 4, 32, 20
    v3 = 2 * mrp3 + 1
    table3 = jax.random.uniform(jax.random.PRNGKey(0), (v3, d3), dtype=jnp.float32)
    out3 = relative_position_embeddings(table3, l3, mrp3)
    out3 = jax.block_until_ready(out3)
    ref3 = _reference(table3, l3, mrp3)
    assert out3.shape == (l3, l3, d3)
    assert jnp.allclose(out3, ref3, atol=1e-6), "mismatch vs reference (padded length)"

    # direction=False branch (idx = min(|i - j|, max_rel_pos)).
    mrp4, d4, l4 = 2, 32, 16
    v4 = mrp4 + 1
    table4 = jax.random.uniform(jax.random.PRNGKey(0), (v4, d4), dtype=jnp.float32)
    out4 = relative_position_embeddings(table4, l4, mrp4, direction=False)
    out4 = jax.block_until_ready(out4)
    ref4 = _reference(table4, l4, mrp4, direction=False)
    assert out4.shape == (l4, l4, d4)
    assert jnp.allclose(out4, ref4, atol=1e-6), "mismatch vs reference (direction=False)"

    print("KERNEL_OK")
</pallas_src>

<mosaic_0001>
module attributes {stable_mosaic.version = 11 : i64} {
  func.func @_rel_pos_emb_kernel(%arg0: i32, %arg1: i32, %arg2: memref<1x256xi32, #tpu.memory_space<vmem>>, %arg3: memref<9x256xf32, #tpu.memory_space<vmem>>, %arg4: memref<8x256xf32, #tpu.memory_space<vmem>>) attributes {dimension_semantics = [#tpu.dimension_semantics<parallel>, #tpu.dimension_semantics<parallel>], iteration_bounds = array<i64: 1, 1>, scalar_prefetch = 0 : i64, scratch_operands = 0 : i64, tpu.core_type = #tpu.core_type<tc>, window_params = [{pipeline_mode = #tpu.pipeline_mode<synchronous>, transform_indices = @transform_0, window_bounds = array<i64: 1, 256>}, {pipeline_mode = #tpu.pipeline_mode<synchronous>, transform_indices = @transform_1, window_bounds = array<i64: 9, 256>}, {transform_indices = @transform_2, window_bounds = array<i64: 8, 256>}]} {
    %c8_i32 = arith.constant 8 : i32
    %0 = arith.muli %arg0, %c8_i32 : i32
    %c8_i32_0 = arith.constant 8 : i32
    %1 = arith.muli %arg1, %c8_i32_0 : i32
    %2 = arith.subi %0, %1 : i32
    %c7_i32 = arith.constant 7 : i32
    %3 = arith.subi %2, %c7_i32 : i32
    %c7_i32_1 = arith.constant 7 : i32
    %4 = arith.addi %2, %c7_i32_1 : i32
    %c4_i32 = arith.constant 4 : i32
    %5 = arith.cmpi sge, %3, %c4_i32 : i32
    %c-4_i32 = arith.constant -4 : i32
    %6 = arith.cmpi sle, %4, %c-4_i32 : i32
    %c4_i32_2 = arith.constant 4 : i32
    %7 = arith.cmpi slt, %3, %c4_i32_2 : i32
    %c-4_i32_3 = arith.constant -4 : i32
    %8 = arith.cmpi sgt, %4, %c-4_i32_3 : i32
    %9 = arith.andi %7, %8 : i1
    %10 = arith.extui %5 : i1 to i32
    %c0_i32 = arith.constant 0 : i32
    %11 = arith.cmpi ne, %10, %c0_i32 : i32
    scf.if %11 {
      %c8 = arith.constant 8 : index
      %c0 = arith.constant 0 : index
      %16 = vector.load %arg3[%c8, %c0] : memref<9x256xf32, #tpu.memory_space<vmem>>, vector<1x256xf32>
      %17 = vector.shape_cast %16 : vector<1x256xf32> to vector<1x256xf32>
      %18 = vector.broadcast %17 : vector<1x256xf32> to vector<8x256xf32>
      %c0_6 = arith.constant 0 : index
      %c0_7 = arith.constant 0 : index
      %19 = vector.load %arg4[%c0_6, %c0_7] : memref<8x256xf32, #tpu.memory_space<vmem>>, vector<8x256xf32>
      tpu.vector_store %arg4[%c0_6, %c0_7], %18 {strides = array<i32>} : memref<8x256xf32, #tpu.memory_space<vmem>>, vector<8x256xf32>,
    } else {
    }
    %12 = arith.extui %6 : i1 to i32
    %c0_i32_4 = arith.constant 0 : i32
    %13 = arith.cmpi ne, %12, %c0_i32_4 : i32
    scf.if %13 {
      %c0 = arith.constant 0 : index
      %c0_6 = arith.constant 0 : index
      %16 = vector.load %arg3[%c0, %c0_6] : memref<9x256xf32, #tpu.memory_space<vmem>>, vector<1x256xf32>
      %17 = vector.shape_cast %16 : vector<1x256xf32> to vector<1x256xf32>
      %18 = vector.broadcast %17 : vector<1x256xf32> to vector<8x256xf32>
      %c0_7 = arith.constant 0 : index
      %c0_8 = arith.constant 0 : index
      %19 = vector.load %arg4[%c0_7, %c0_8] : memref<8x256xf32, #tpu.memory_space<vmem>>, vector<8x256xf32>
      tpu.vector_store %arg4[%c0_7, %c0_8], %18 {strides = array<i32>} : memref<8x256xf32, #tpu.memory_space<vmem>>, vector<8x256xf32>,
    } else {
    }
    %14 = arith.extui %9 : i1 to i32
    %c0_i32_5 = arith.constant 0 : i32
    %15 = arith.cmpi ne, %14, %c0_i32_5 : i32
    scf.if %15 {
      %16 = tpu.iota {dimensions = array<i32: 0>} : vector<8x256xi32>
      %c0 = arith.constant 0 : index
      %c0_6 = arith.constant 0 : index
      %17 = vector.load %arg2[%c0, %c0_6] : memref<1x256xi32, #tpu.memory_space<vmem>>, vector<1x256xi32>
      %18 = vector.broadcast %2 : i32 to vector<1x256xi32>
      %19 = arith.subi %17, %18 : vector<1x256xi32>
      %20 = vector.broadcast %19 : vector<1x256xi32> to vector<8x256xi32>
      %21 = arith.subi %16, %20 : vector<8x256xi32>
      %c0_7 = arith.constant 0 : index
      %c0_8 = arith.constant 0 : index
      %22 = vector.load %arg3[%c0_7, %c0_8] : memref<9x256xf32, #tpu.memory_space<vmem>>, vector<9x256xf32>
      %23 = vector.extract_strided_slice %22 {offsets = [0, 0], sizes = [1, 256], strides = [1, 1]} : vector<9x256xf32> to vector<1x256xf32>
      %24 = vector.shape_cast %23 : vector<1x256xf32> to vector<1x256xf32>
      %25 = vector.broadcast %24 : vector<1x256xf32> to vector<8x256xf32>
      %c-3_i32 = arith.constant -3 : i32
      %26 = vector.broadcast %c-3_i32 : i32 to vector<8x256xi32>
      %27 = arith.cmpi sge, %21, %26 : vector<8x256xi32>
      %28 = vector.extract_strided_slice %22 {offsets = [1, 0], sizes = [1, 256], strides = [1, 1]} : vector<9x256xf32> to vector<1x256xf32>
      %29 = vector.shape_cast %28 : vector<1x256xf32> to vector<1x256xf32>
      %30 = vector.broadcast %29 : vector<1x256xf32> to vector<8x256xf32>
      %31 = arith.select %27, %30, %25 : vector<8x256xi1>, vector<8x256xf32>
      %c-2_i32 = arith.constant -2 : i32
      %32 = vector.broadcast %c-2_i32 : i32 to vector<8x256xi32>
      %33 = arith.cmpi sge, %21, %32 : vector<8x256xi32>
      %34 = vector.extract_strided_slice %22 {offsets = [2, 0], sizes = [1, 256], strides = [1, 1]} : vector<9x256xf32> to vector<1x256xf32>
      %35 = vector.shape_cast %34 : vector<1x256xf32> to vector<1x256xf32>
      %36 = vector.broadcast %35 : vector<1x256xf32> to vector<8x256xf32>
      %37 = arith.select %33, %36, %31 : vector<8x256xi1>, vector<8x256xf32>
      %c-1_i32 = arith.constant -1 : i32
      %38 = vector.broadcast %c-1_i32 : i32 to vector<8x256xi32>
      %39 = arith.cmpi sge, %21, %38 : vector<8x256xi32>
      %40 = vector.extract_strided_slice %22 {offsets = [3, 0], sizes = [1, 256], strides = [1, 1]} : vector<9x256xf32> to vector<1x256xf32>
      %41 = vector.shape_cast %40 : vector<1x256xf32> to vector<1x256xf32>
      %42 = vector.broadcast %41 : vector<1x256xf32> to vector<8x256xf32>
      %43 = arith.select %39, %42, %37 : vector<8x256xi1>, vector<8x256xf32>
      %c0_i32_9 = arith.constant 0 : i32
      %44 = vector.broadcast %c0_i32_9 : i32 to vector<8x256xi32>
      %45 = arith.cmpi sge, %21, %44 : vector<8x256xi32>
      %46 = vector.extract_strided_slice %22 {offsets = [4, 0], sizes = [1, 256], strides = [1, 1]} : vector<9x256xf32> to vector<1x256xf32>
      %47 = vector.shape_cast %46 : vector<1x256xf32> to vector<1x256xf32>
      %48 = vector.broadcast %47 : vector<1x256xf32> to vector<8x256xf32>
      %49 = arith.select %45, %48, %43 : vector<8x256xi1>, vector<8x256xf32>
      %c1_i32 = arith.constant 1 : i32
      %50 = vector.broadcast %c1_i32 : i32 to vector<8x256xi32>
      %51 = arith.cmpi sge, %21, %50 : vector<8x256xi32>
      %52 = vector.extract_strided_slice %22 {offsets = [5, 0], sizes = [1, 256], strides = [1, 1]} : vector<9x256xf32> to vector<1x256xf32>
      %53 = vector.shape_cast %52 : vector<1x256xf32> to vector<1x256xf32>
      %54 = vector.broadcast %53 : vector<1x256xf32> to vector<8x256xf32>
      %55 = arith.select %51, %54, %49 : vector<8x256xi1>, vector<8x256xf32>
      %c2_i32 = arith.constant 2 : i32
      %56 = vector.broadcast %c2_i32 : i32 to vector<8x256xi32>
      %57 = arith.cmpi sge, %21, %56 : vector<8x256xi32>
      %58 = vector.extract_strided_slice %22 {offsets = [6, 0], sizes = [1, 256], strides = [1, 1]} : vector<9x256xf32> to vector<1x256xf32>
      %59 = vector.shape_cast %58 : vector<1x256xf32> to vector<1x256xf32>
      %60 = vector.broadcast %59 : vector<1x256xf32> to vector<8x256xf32>
      %61 = arith.select %57, %60, %55 : vector<8x256xi1>, vector<8x256xf32>
      %c3_i32 = arith.constant 3 : i32
      %62 = vector.broadcast %c3_i32 : i32 to vector<8x256xi32>
      %63 = arith.cmpi sge, %21, %62 : vector<8x256xi32>
      %64 = vector.extract_strided_slice %22 {offsets = [7, 0], sizes = [1, 256], strides = [1, 1]} : vector<9x256xf32> to vector<1x256xf32>
      %65 = vector.shape_cast %64 : vector<1x256xf32> to vector<1x256xf32>
      %66 = vector.broadcast %65 : vector<1x256xf32> to vector<8x256xf32>
      %67 = arith.select %63, %66, %61 : vector<8x256xi1>, vector<8x256xf32>
      %c4_i32_10 = arith.constant 4 : i32
      %68 = vector.broadcast %c4_i32_10 : i32 to vector<8x256xi32>
      %69 = arith.cmpi sge, %21, %68 : vector<8x256xi32>
      %70 = vector.extract_strided_slice %22 {offsets = [8, 0], sizes = [1, 256], strides = [1, 1]} : vector<9x256xf32> to vector<1x256xf32>
      %71 = vector.shape_cast %70 : vector<1x256xf32> to vector<1x256xf32>
      %72 = vector.broadcast %71 : vector<1x256xf32> to vector<8x256xf32>
      %73 = arith.select %69, %72, %67 : vector<8x256xi1>, vector<8x256xf32>
      %c0_11 = arith.constant 0 : index
      %c0_12 = arith.constant 0 : index
      %74 = vector.load %arg4[%c0_11, %c0_12] : memref<8x256xf32, #tpu.memory_space<vmem>>, vector<8x256xf32>
      tpu.vector_store %arg4[%c0_11, %c0_12], %73 {strides = array<i32>} : memref<8x256xf32, #tpu.memory_space<vmem>>, vector<8x256xf32>,
    } else {
    }
    return
  }
  func.func @transform_0(%arg0: i32, %arg1: i32) -> (i32, i32) {
    %c0_i32 = arith.constant 0 : i32
    %c0_i32_0 = arith.constant 0 : i32
    %c0_i32_1 = arith.constant 0 : i32
    return %c0_i32, %c0_i32_0 : i32, i32
  }
  func.func @transform_1(%arg0: i32, %arg1: i32) -> (i32, i32) {
    %c0_i32 = arith.constant 0 : i32
    %c0_i32_0 = arith.constant 0 : i32
    %c0_i32_1 = arith.constant 0 : i32
    return %c0_i32, %c0_i32_0 : i32, i32
  }
  func.func @transform_2(%arg0: i32, %arg1: i32) -> (i32, i32) {
    %c0_i32 = arith.constant 0 : i32
    return %arg0, %arg1 : i32, i32
  }
}

</mosaic_0001>

<bundles_post_ra>
// kernel: tpu_custom_call.1
= control target key start
LH: loop header
LB: loop body
LE: loop exit
PB: predicated region body
PF: predicated region fallthrough
CT: control target
= control target key end

     0   :  { %7 = vsyncpa [#allocation3], 0  ;;  %s385_s0 = inlined_call_operand.hbm [shape: s32[1,256], index: 0, kind: input, shape index: {}]   ;;  %s386_s1 = inlined_call_operand.hbm [shape: f32[9,256], index: 1, kind: input, shape index: {}]   ;;  %s387_s2 = inlined_call_operand.hbm [shape: f32[8,256], index: 2, kind: output, shape index: {}]  }
   0x1   :  { %8 = vsyncpa [#allocation6], 0 }
   0x2   :  { %9 = vsyncpa [#allocation4], 0  ;;  %s306_s9 = smov [#allocation2]   ;;  %s307_s11 = smov [#allocation5]  }
   0x3   :  { %s16_s10 = sshll.u32 %s306_s9, 4  ;;  %s25_s12 = sshll.u32 %s307_s11, 4  ;;  %s17_s10 = int_to_ptr.vmem [resolvable:$true] %s16_s10  ;;  %s326_s12 = int_to_ptr.vmem [resolvable:$true] %s25_s12 }
   0x4   :  { %s234_s15 = scalar_lea.hbm %s385_s0, 32 }
   0x5   :  { %p235_p0 = scmp.ne.s32.totalorder %s385_s0, %s234_s15  ;;  %p238_p1 = scmp.lt.u32.totalorder %s234_s15, %s385_s0 }
   0x7   :  { %p240_p2 = pnand %p238_p1, %p235_p0 }
   0x9   :  { %243 = shalt.err (!%p240_p2)
}
   0xa   :  { %s244_s20 = scalar_lea.vmem %s17_s10, 32  ;;  %p249_p4 = scmp.lt.s32.totalorder %s17_s10, %s17_s10 }
   0xb   :  { %p245_p3 = scmp.ne.s32.totalorder %s17_s10, %s244_s20  ;;  %p250_p5 = scmp.lt.s32.totalorder %s244_s20, %s244_s20 }
   0xd   :  { %p251_p6 = por %p250_p5, %p249_p4 }
   0xf   :  { %p252_p7 = pnand %p251_p6, %p245_p3 }
  0x11   :  { %255 = shalt.err (!%p252_p7)
}
  0x12   :  { %19 = dma.hbm_to_vmem [thread:$0]  %s385_s0, 32, %s17_s10, [#allocation3]  }
  0x13   :  { %s256_s25 = scalar_lea.hbm %s386_s1, 512 }
  0x14   :  { %p257_p8 = scmp.ne.s32.totalorder %s386_s1, %s256_s25  ;;  %p260_p9 = scmp.lt.u32.totalorder %s256_s25, %s386_s1 }
  0x16   :  { %p262_p10 = pnand %p260_p9, %p257_p8 }
  0x18   :  { %265 = shalt.err (!%p262_p10)
}
  0x19   :  { %s266_s30 = scalar_lea.vmem %s326_s12, 512  ;;  %p271_p12 = scmp.lt.s32.totalorder %s326_s12, %s326_s12 }
  0x1a   :  { %p267_p11 = scmp.ne.s32.totalorder %s326_s12, %s266_s30  ;;  %p272_p13 = scmp.lt.s32.totalorder %s266_s30, %s266_s30 }
  0x1c   :  { %p273_p0 = por %p272_p13, %p271_p12 }
  0x1e   :  { %p274_p1 = pnand %p273_p0, %p267_p11 }
  0x20   :  { %277 = shalt.err (!%p274_p1)
}
  0x21   :  { %s308_s0 = smov 256   ;;  %s309_s3 = smov 16  }
  0x22   :  { %31 = dma.hbm_to_vmem [thread:$0]  %s386_s1, 512, %s326_s12, [#allocation6], %s308_s0, %s308_s0, %s309_s3  }
  0x23   :  { %300 = dma.done.wait [#allocation3], 32  }
  0x24   :  { %301 = vsyncadd [#allocation3], 4294967264 }
  0x25   :  { %302 = dma.done.wait [#allocation6], 512  }
  0x26   :  { %303 = vsyncadd [#allocation6], 4294966784  ;;  %v86_v0 = vlaneseq  ;;  %v88_v10 = vld [vmem:[#allocation2] sm:$0x3]  ;;  %v101_v11 = vld [vmem:[#allocation5] sm:$0xff]  ;;  %s310_s1 = smov [#allocation7]  }
  0x27   :  { %v102_v16 = vld [vmem:[#allocation5 + $0x8] sm:$0xff]  ;;  %v227_v36 = vld [vmem:[#allocation5 + $0x10] ss:$0 sm:$0xff]  ;;  %s217_s6 = sshll.u32 %s310_s1, 4  ;;  %v228_v44 = vld [vmem:[#allocation5 + $0x18] ss:$0 sm:$0xff]  ;;  %s218_s6 = int_to_ptr.vmem [resolvable:$true] %s217_s6 }
  0x28   :  { %v357_v1 = vshrl.u32 %v86_v0, 7  ;;  %s278_s7 = scalar_lea.vmem %s218_s6, 256  ;;  %p283_p3 = scmp.lt.s32.totalorder %s218_s6, %s218_s6 }
  0x29   :  { %p279_p2 = scmp.ne.s32.totalorder %s218_s6, %s278_s7  ;;  %p284_p4 = scmp.lt.s32.totalorder %s278_s7, %s278_s7 }
  0x2a   :  { %v93_v2 = vsub.s32 0, %v357_v1  ;;  %v97_v3 = vsub.s32 1, %v357_v1  ;;  %v129_v4 = vsub.s32 2, %v357_v1  ;;  %v141_v5 = vsub.s32 3, %v357_v1 }
  0x2b   :  { %v153_v6 = vsub.s32 4, %v357_v1  ;;  %v165_v7 = vsub.s32 5, %v357_v1  ;;  %v177_v8 = vsub.s32 6, %v357_v1  ;;  %v189_v9 = vsub.s32 7, %v357_v1  ;;  %p285_p5 = por %p284_p4, %p283_p3 }
  0x2c   :  { %v94_v12 = vrot.slane %v88_v10, %v93_v2  ;;  %v98_v13 = vrot.slane %v88_v10, %v97_v3  ;;  %v108_v14 = vrot.slane %v101_v11, %v93_v2  ;;  %v118_v15 = vrot.slane %v101_v11, %v97_v3 }
  0x2d   :  { %v130_v17 = vrot.slane %v101_v11, %v129_v4  ;;  %v142_v18 = vrot.slane %v101_v11, %v141_v5  ;;  %v154_v19 = vrot.slane %v101_v11, %v153_v6  ;;  %v166_v20 = vrot.slane %v101_v11, %v165_v7  ;;  %p286_p6 = pnand %p285_p5, %p279_p2 }
  0x2e   :  { %v99_v21 = vsub.s32 %v357_v1, %v94_v12  ;;  %v100_v22 = vsub.s32 %v357_v1, %v98_v13  ;;  %v178_v23 = vrot.slane %v101_v11, %v177_v8  ;;  %v190_v24 = vrot.slane %v101_v11, %v189_v9 }
  0x2f   :  { %v112_v25 = vrot.slane %v102_v16, %v93_v2  ;;  %v122_v26 = vrot.slane %v102_v16, %v97_v3  ;;  %v134_v27 = vrot.slane %v102_v16, %v129_v4  ;;  %v146_v28 = vrot.slane %v102_v16, %v141_v5 }
  0x30   :  { %vm113_vm0 = vcmp.ge.s32.totalorder %v99_v21, 4294967293  ;;  %vm125_vm1 = vcmp.ge.s32.totalorder %v99_v21, 4294967294  ;;  %vm137_vm2 = vcmp.ge.s32.totalorder %v99_v21, 4294967295  ;;  %vm149_vm3 = vcmp.ge.s32.totalorder %v99_v21, 0 }
  0x31   :  { %v123_v29 = vsel %vm113_vm0, %v118_v15, %v108_v14  ;;  %vm161_vm4 = vcmp.ge.s32.totalorder %v99_v21, 1  ;;  %vm173_vm5 = vcmp.ge.s32.totalorder %v99_v21, 2  ;;  %vm185_vm6 = vcmp.ge.s32.totalorder %v99_v21, 3 }
  0x32   :  { %v135_v30 = vsel %vm125_vm1, %v130_v17, %v123_v29  ;;  %vm197_vm7 = vcmp.ge.s32.totalorder %v99_v21, 4  ;;  %vm114_vm8 = vcmp.ge.s32.totalorder %v100_v22, 4294967293  ;;  %vm126_vm9 = vcmp.ge.s32.totalorder %v100_v22, 4294967294 }
  0x33   :  { %v147_v31 = vsel %vm137_vm2, %v142_v18, %v135_v30  ;;  %v124_v32 = vsel %vm114_vm8, %v122_v26, %v112_v25  ;;  %vm138_vm10 = vcmp.ge.s32.totalorder %v100_v22, 4294967295  ;;  %vm150_vm11 = vcmp.ge.s32.totalorder %v100_v22, 0 }
  0x34   :  { %v159_v33 = vsel %vm149_vm3, %v154_v19, %v147_v31  ;;  %v136_v34 = vsel %vm126_vm9, %v134_v27, %v124_v32  ;;  %v158_v35 = vrot.slane %v102_v16, %v153_v6  ;;  %vm162_vm12 = vcmp.ge.s32.totalorder %v100_v22, 1 }
  0x35   :  { %v171_v37 = vsel %vm161_vm4, %v166_v20, %v159_v33  ;;  %v148_v38 = vsel %vm138_vm10, %v146_v28, %v136_v34  ;;  %v170_v39 = vrot.slane %v102_v16, %v165_v7  ;;  %vm174_vm13 = vcmp.ge.s32.totalorder %v100_v22, 2 }
  0x36   :  { %v183_v40 = vsel %vm173_vm5, %v178_v23, %v171_v37  ;;  %v160_v41 = vsel %vm150_vm11, %v158_v35, %v148_v38  ;;  %v182_v42 = vrot.slane %v102_v16, %v177_v8  ;;  %vm186_vm14 = vcmp.ge.s32.totalorder %v100_v22, 3 }
  0x37   :  { %v195_v43 = vsel %vm185_vm6, %v190_v24, %v183_v40  ;;  %v172_v45 = vsel %vm162_vm12, %v170_v39, %v160_v41  ;;  %v194_v46 = vrot.slane %v102_v16, %v189_v9  ;;  %vm198_vm15 = vcmp.ge.s32.totalorder %v100_v22, 4 }
  0x38   :  { %v207_v47 = vsel %vm197_vm7, %v227_v36, %v195_v43  ;;  %v184_v48 = vsel %vm174_vm13, %v182_v42, %v172_v45 }
  0x39   :  { %209 = vst [vmem:[#allocation7] sm:$0xff] %v207_v47  ;;  %v196_v49 = vsel %vm186_vm14, %v194_v46, %v184_v48 }
  0x3a   :  { %v208_v50 = vsel %vm198_vm15, %v228_v44, %v196_v49 }
  0x3b   :  { %210 = vst [vmem:[#allocation7 + $0x8] sm:$0xff] %v208_v50 }
  0x3c   :  { %289 = shalt.err (!%p286_p6)
}
  0x3d   :  { %s290_s10 = scalar_lea.hbm %s387_s2, 256 }
  0x3e   :  { %p291_p7 = scmp.ne.s32.totalorder %s387_s2, %s290_s10  ;;  %p294_p8 = scmp.lt.u32.totalorder %s290_s10, %s387_s2 }
  0x40   :  { %p296_p9 = pnand %p294_p8, %p291_p7 }
  0x42   :  { %299 = shalt.err (!%p296_p9)
}
  0x43   :  { %220 = dma.vmem_to_hbm [thread:$0]  %s218_s6, 256, %s387_s2, [#allocation4]  }
  0x44   :  { %304 = dma.done.wait [#allocation4], 256  }
  0x45   :  { %305 = vsyncadd [#allocation4], 4294967040 }
  0x46   :  { %224 = vsyncpa [#allocation3], 1 }
  0x47   :  { %225 = vsyncpa [#allocation6], 1 }
  0x48   :  { %226 = vsyncpa [#allocation4], 1 }

</bundles_post_ra>
